<compile_context>
chip_gen: v6e
topology: v6e:2x2x1
jax: 0.10.0
libtpu: 0.0.40
codegen_flags: <defaults>
</compile_context>

<pallas_src>
import functools

import jax
import jax.numpy as jnp
from jax.experimental import pallas as pl
from jax.experimental.pallas import tpu as pltpu


def rmsnorm_kernel(x_ref, w_ref, o_ref, *, eps):
    # x_ref: (R, C) tile of rows, w_ref: (1, C) resident weight.
    x = x_ref[...].astype(jnp.float32)                       # f32 elementwise path
    ms = jnp.mean(x * x, axis=-1, keepdims=True)             # (R, 1) lane reduce (XLU)
    xn = x * jax.lax.rsqrt(ms + eps)                         # rsqrt on the EUP slot
    o_ref[...] = (xn * w_ref[...].astype(jnp.float32)).astype(o_ref.dtype)


def rmsnorm(x, weight, *, eps=1e-6, block_rows=256):
    """RMSNorm over the last dim of x; matches the torch module's forward."""
    orig_shape = x.shape
    C = orig_shape[-1]
    x2 = x.reshape(-1, C)                 # fold batch/seq into the row (M) dim
    N = x2.shape[0]

    # Row tile: multiple of 8 sublanes, capped at block_rows (itself a mult. of 8).
    n8 = ((N + 7) // 8) * 8
    R = min(block_rows, n8)
    Np = ((N + R - 1) // R) * R           # pad rows to a multiple of the tile
    if Np != N:
        x2 = jnp.concatenate(
            [x2, jnp.zeros((Np - N, C), dtype=x2.dtype)], axis=0)

    w2 = weight.reshape(1, C)

    kernel = functools.partial(rmsnorm_kernel, eps=eps)
    out = pl.pallas_call(
        kernel,
        out_shape=jax.ShapeDtypeStruct((Np, C), x.dtype),
        grid=(Np // R,),
        in_specs=[
            pl.BlockSpec((R, C), lambda i: (i, 0)),   # activations: row tiles
            pl.BlockSpec((1, C), lambda i: (0, 0)),   # weight: constant block, VMEM-resident
        ],
        out_specs=pl.BlockSpec((R, C), lambda i: (i, 0)),
        compiler_params=pltpu.CompilerParams(
            dimension_semantics=("parallel",)),       # row tiles are independent (megacore)
    )(x2, w2)

    if Np != N:
        out = out[:N]
    return out.reshape(orig_shape)


def rmsnorm_ref(x, weight, eps=1e-6):
    """Pure-JAX reference with the same math as the torch module."""
    xf = x.astype(jnp.float32)
    ms = jnp.mean(xf * xf, axis=-1, keepdims=True)
    xn = xf * jax.lax.rsqrt(ms + eps)
    return (xn * weight.astype(jnp.float32)).astype(x.dtype)


if __name__ == "__main__":
    # Small config consistent with the module: embdim=128, batch=2, seq=16.
    B, T, C = 2, 16, 128

    key = jax.random.PRNGKey(0)
    kx, kw = jax.random.split(key)

    x = jax.random.normal(kx, (B, T, C), jnp.float32).astype(jnp.bfloat16)
    # Parameter initialized to ones in the module; perturb it so the test is
    # non-trivial while keeping it a valid parameter value.
    weight = (1.0 + 0.1 * jax.random.normal(kw, (C,), jnp.float32))

    out = rmsnorm(x, weight, eps=1e-6)
    out = jax.block_until_ready(out)

    assert out.shape == (B, T, C) and out.dtype == x.dtype

    ref = rmsnorm_ref(x, weight, eps=1e-6)
    err = float(jnp.max(jnp.abs(out.astype(jnp.float32) - ref.astype(jnp.float32))))
    assert err < 2e-2, f"max abs error {err}"

    print("KERNEL_OK")
</pallas_src>

<mosaic_0001>
module attributes {stable_mosaic.version = 11 : i64} {
  func.func @rmsnorm_kernel(%arg0: i32, %arg1: memref<32x128xbf16, #tpu.memory_space<vmem>>, %arg2: memref<1x128xf32, #tpu.memory_space<vmem>>, %arg3: memref<32x128xbf16, #tpu.memory_space<vmem>>) attributes {dimension_semantics = [#tpu.dimension_semantics<parallel>], iteration_bounds = array<i64: 1>, scalar_prefetch = 0 : i64, scratch_operands = 0 : i64, tpu.core_type = #tpu.core_type<tc>, window_params = [{transform_indices = @transform_0, window_bounds = array<i64: 32, 128>}, {pipeline_mode = #tpu.pipeline_mode<synchronous>, transform_indices = @transform_1, window_bounds = array<i64: 1, 128>}, {transform_indices = @transform_2, window_bounds = array<i64: 32, 128>}]} {
    %c0 = arith.constant 0 : index
    %c0_0 = arith.constant 0 : index
    %0 = vector.load %arg1[%c0, %c0_0] : memref<32x128xbf16, #tpu.memory_space<vmem>>, vector<32x128xbf16>
    %1 = arith.extf %0 : vector<32x128xbf16> to vector<32x128xf32>
    %2 = arith.mulf %1, %1 : vector<32x128xf32>
    %cst = arith.constant dense<0.000000e+00> : vector<32xf32>
    %3 = vector.multi_reduction <add>, %2, %cst [1] : vector<32x128xf32> to vector<32xf32>
    %4 = vector.shape_cast %3 : vector<32xf32> to vector<32x1xf32>
    %cst_1 = arith.constant 1.280000e+02 : f32
    %5 = vector.broadcast %cst_1 : f32 to vector<32x1xf32>
    %6 = arith.divf %4, %5 : vector<32x1xf32>
    %cst_2 = arith.constant 9.99999997E-7 : f32
    %7 = vector.broadcast %cst_2 : f32 to vector<32x1xf32>
    %8 = arith.addf %6, %7 : vector<32x1xf32>
    %9 = math.rsqrt %8 : vector<32x1xf32>
    %10 = vector.broadcast %9 : vector<32x1xf32> to vector<32x128xf32>
    %11 = arith.mulf %1, %10 : vector<32x128xf32>
    %c0_3 = arith.constant 0 : index
    %c0_4 = arith.constant 0 : index
    %12 = vector.load %arg2[%c0_3, %c0_4] : memref<1x128xf32, #tpu.memory_space<vmem>>, vector<1x128xf32>
    %13 = vector.broadcast %12 : vector<1x128xf32> to vector<32x128xf32>
    %14 = arith.mulf %11, %13 : vector<32x128xf32>
    %15 = arith.truncf %14 : vector<32x128xf32> to vector<32x128xbf16>
    %c0_5 = arith.constant 0 : index
    %c0_6 = arith.constant 0 : index
    %16 = vector.load %arg3[%c0_5, %c0_6] : memref<32x128xbf16, #tpu.memory_space<vmem>>, vector<32x128xbf16>
    tpu.vector_store %arg3[%c0_5, %c0_6], %15 {strides = array<i32>} : memref<32x128xbf16, #tpu.memory_space<vmem>>, vector<32x128xbf16>,
    return
  }
  func.func @transform_0(%arg0: i32) -> (i32, i32) {
    %c0_i32 = arith.constant 0 : i32
    %c0_i32_0 = arith.constant 0 : i32
    return %arg0, %c0_i32 : i32, i32
  }
  func.func @transform_1(%arg0: i32) -> (i32, i32) {
    %c0_i32 = arith.constant 0 : i32
    %c0_i32_0 = arith.constant 0 : i32
    %c0_i32_1 = arith.constant 0 : i32
    return %c0_i32, %c0_i32_0 : i32, i32
  }
  func.func @transform_2(%arg0: i32) -> (i32, i32) {
    %c0_i32 = arith.constant 0 : i32
    %c0_i32_0 = arith.constant 0 : i32
    return %arg0, %c0_i32 : i32, i32
  }
}

</mosaic_0001>

<bundles_post_ra>
// kernel: tpu_custom_call.1
= control target key start
LH: loop header
LB: loop body
LE: loop exit
PB: predicated region body
PF: predicated region fallthrough
CT: control target
= control target key end

     0   :  { %7 = vsyncpa [#allocation3], 0  ;;  %s230_s0 = inlined_call_operand.hbm [shape: bf16[32,128], index: 0, kind: input, shape index: {}]   ;;  %s231_s1 = inlined_call_operand.vmem [shape: f32[1,128], index: 1, kind: input, shape index: {}]   ;;  %s232_s2 = inlined_call_operand.hbm [shape: bf16[32,128], index: 2, kind: output, shape index: {}]  }
   0x1   :  { %8 = vsyncpa [#allocation4], 0  ;;  %s196_s9 = smov [#allocation2]  }
   0x2   :  { %s14_s10 = sshll.u32 %s196_s9, 4  ;;  %s15_s10 = int_to_ptr.vmem [resolvable:$true] %s14_s10 }
   0x3   :  { %s160_s11 = scalar_lea.vmem %s15_s10, 256  ;;  %p165_p1 = scmp.lt.s32.totalorder %s15_s10, %s15_s10 }
   0x4   :  { %p161_p0 = scmp.ne.s32.totalorder %s15_s10, %s160_s11  ;;  %p166_p2 = scmp.lt.s32.totalorder %s160_s11, %s160_s11 }
   0x6   :  { %p167_p3 = por %p166_p2, %p165_p1 }
   0x8   :  { %p168_p4 = pnand %p167_p3, %p161_p0 }
   0xa   :  { %171 = shalt.err (!%p168_p4)
}
   0xb   :  { %s197_s12 = smov 64   ;;  %s198_s13 = smov 4  }
   0xc   :  { %20 = dma.hbm_to_vmem [thread:$0]  %s230_s0, 256, %s15_s10, [#allocation3], %s197_s12, %s197_s12, %s198_s13  }
   0xd   :  { %192 = dma.done.wait [#allocation3], 256  }
   0xe   :  { %193 = vsyncadd [#allocation3], 4294967040  ;;  %v138_v0 = vld [vmem:[#allocation2 + $0x8] sm:$0xff]   ;;  %v121_v1 = vld [vmem:[#allocation2] sm:$0xff]   ;;  %s199_s17 = smov [#allocation5]  }
   0xf   :  { %v126_v2 = vunpack.c.l.bf16 %v138_v0  ;;  %v122_v3 = vunpack.c.l.bf16 %v121_v1  ;;  %v127_v4 = vunpack.c.h.bf16 %v138_v0  ;;  %v123_v5 = vunpack.c.h.bf16 %v121_v1  ;;  %v111_v27 = vld [vmem:[%s231_s1] ss:$0 sm:$0xff]  ;;  %s99_s18 = sshll.u32 %s199_s17, 4  ;;  %s100_s18 = int_to_ptr.vmem [resolvable:$true] %s99_s18 }
  0x10   :  { %s172_s19 = scalar_lea.vmem %s100_s18, 256  ;;  %p177_p6 = scmp.lt.s32.totalorder %s100_s18, %s100_s18 }
  0x11   :  { %v36_v6 = vmul.f32 %v126_v2, %v126_v2  ;;  %v34_v7 = vmul.f32 %v122_v3, %v122_v3  ;;  %v37_v8 = vmul.f32 %v127_v4, %v127_v4  ;;  %v35_v9 = vmul.f32 %v123_v5, %v123_v5  ;;  %p173_p5 = scmp.ne.s32.totalorder %s100_s18, %s172_s19  ;;  %p178_p7 = scmp.lt.s32.totalorder %s172_s19, %s172_s19 }
  0x13   :  { %42 = vadd.xlane.f32.xlu1 %v36_v6  ;;  %38 = vadd.xlane.f32.xlu0 %v34_v7  ;;  %p179_p8 = por %p178_p7, %p177_p6 }
  0x15   :  { %p180_p9 = pnand %p179_p8, %p173_p5 }
  0x17   :  { %44 = vadd.xlane.f32.xlu1 %v37_v8  ;;  %40 = vadd.xlane.f32.xlu0 %v35_v9 }
  0x9c   :  { %v43_v10 = vpop.xlane.xlu1 %42  ;;  %v39_v11 = vpop.xlane.xlu0 %38 }
  0x9d   :  { %v49_v12 = vmul.f32 0.0078125, %v43_v10  ;;  %v47_v13 = vmul.f32 0.0078125, %v39_v11 }
  0x9f   :  { %v53_v14 = vadd.f32 1e-06, %v49_v12  ;;  %v51_v15 = vadd.f32 1e-06, %v47_v13 }
  0xa0   :  { %v45_v16 = vpop.xlane.xlu1 %44  ;;  %v41_v17 = vpop.xlane.xlu0 %40 }
  0xa1   :  { %144 = vrsqrt.f32 %v53_v14  ;;  %v50_v18 = vmul.f32 0.0078125, %v45_v16  ;;  %v48_v19 = vmul.f32 0.0078125, %v41_v17 }
  0xa2   :  { %146 = vrsqrt.f32 %v51_v15 }
  0xa3   :  { %v54_v20 = vadd.f32 1e-06, %v50_v18  ;;  %v52_v21 = vadd.f32 1e-06, %v48_v19 }
  0xa5   :  { %148 = vrsqrt.f32 %v54_v20 }
  0xa6   :  { %150 = vrsqrt.f32 %v52_v21 }
  0xae   :  { %v145_v22 = vpop.eup %144 }
  0xaf   :  { %v147_v23 = vpop.eup %146  ;;  %v61_v24 = vmul.f32 %v145_v22, %v126_v2 }
  0xb0   :  { %v59_v26 = vmul.f32 %v147_v23, %v122_v3 }
  0xb1   :  { %v72_v31 = vmul.f32 %v111_v27, %v61_v24 }
  0xb2   :  { %v149_v25 = vpop.eup %148  ;;  %v70_v33 = vmul.f32 %v111_v27, %v59_v26 }
  0xb3   :  { %v151_v28 = vpop.eup %150  ;;  %v62_v29 = vmul.f32 %v149_v25, %v127_v4 }
  0xb4   :  { %v60_v30 = vmul.f32 %v151_v28, %v123_v5 }
  0xb5   :  { %v73_v32 = vmul.f32 %v111_v27, %v62_v29 }
  0xb6   :  { %v71_v34 = vmul.f32 %v111_v27, %v60_v30 }
  0xb7   :  { %v136_v35 = vpack.c.bf16 %v73_v32, %v72_v31 }
  0xb8   :  { %v131_v36 = vpack.c.bf16 %v71_v34, %v70_v33 }
  0xb9   :  { %139 = vst [vmem:[#allocation5 + $0x8] sm:$0xff] %v136_v35  }
  0xba   :  { %132 = vst [vmem:[#allocation5] sm:$0xff] %v131_v36  }
  0xbb   :  { %183 = shalt.err (!%p180_p9)
}
  0xbc   :  { %105 = dma.vmem_to_hbm [thread:$0]  %s100_s18, 256, %s232_s2, [#allocation4], %s197_s12, %s197_s12, %s198_s13  }
  0xbd   :  { %194 = dma.done.wait [#allocation4], 256  }
  0xbe   :  { %195 = vsyncadd [#allocation4], 4294967040 }
  0xbf   :  { %109 = vsyncpa [#allocation3], 1 }
  0xc0   :  { %110 = vsyncpa [#allocation4], 1 }

</bundles_post_ra>
